<compile_context>
chip_gen: v6e
topology: v6e:2x2x1
jax: 0.10.0
libtpu: 0.0.40
codegen_flags: <defaults>
</compile_context>

<pallas_src>
import math
import numpy as np
import jax
import jax.numpy as jnp
from jax.experimental import pallas as pl

# ----------------------------- configuration --------------------------------
N_WIRES = 4
N_QFEATURES = 7
N_QCLAYERS = 3
N_QELAYERS = math.ceil(N_QFEATURES / N_WIRES)        # 2
TO_PAD = N_QELAYERS * N_WIRES - N_QFEATURES          # 1
DIM = 2 ** N_WIRES                                   # 16 statevector amplitudes
BDIM = 2 * DIM                                       # 32 block-complex dimension
CE_PAD_OUT = 128                                     # lane-dense CE output width


# --------------------------- Pallas kernel: CE ------------------------------
def ce_kernel(x_ref, w_ref, b_ref, o_ref):
    # (1, F) @ (F, 128) + (1, 128): lane-dense output -> unmasked vector stores.
    o_ref[...] = jnp.dot(x_ref[...], w_ref[...],
                         preferred_element_type=jnp.float32) + b_ref[...]


def ce_linear(x_flat, w_pad, b_pad):
    f_in = x_flat.shape[1]
    n_out = w_pad.shape[1]                           # 128 (padded)
    return pl.pallas_call(
        ce_kernel,
        out_shape=jax.ShapeDtypeStruct((1, n_out), jnp.float32),
        grid=(1,),
        in_specs=[pl.BlockSpec((1, f_in), lambda i: (0, 0)),
                  pl.BlockSpec((f_in, n_out), lambda i: (0, 0)),
                  pl.BlockSpec((1, n_out), lambda i: (0, 0))],
        out_specs=pl.BlockSpec((1, n_out), lambda i: (0, 0)),
    )(x_flat, w_pad, b_pad)


# -------------------- Pallas kernel: quantum circuit ------------------------
def circuit_kernel(u_ref, out_ref):
    """Statevector evolution + <Z0> + final [p, 1-p] in one grid point.

    u_ref: (L, 32, 32) block-complex layer unitaries [[re, -im], [im, re]].
    The state is a single (32, 1) [re; im] column; each layer is one MXU push
    (32x32)@(32x1) instead of 4 real matvecs.  The layer loop (L=5) is fully
    unrolled in-kernel: no per-layer grid step, no VMEM scratch.
    """
    idx = jax.lax.broadcasted_iota(jnp.int32, (BDIM, 1), 0)
    # |0...0>  ->  re part is e_0, im part is 0.
    state = jnp.where(idx == 0, 1.0, 0.0).astype(jnp.float32)
    # <Z0> sign: depends on the MSB (wire 0) of the 4-bit basis index; the imag
    # half (k >= 16) has the same bit pattern, so one formula covers both halves.
    sign = jnp.where((idx & (1 << (N_WIRES - 1))) != 0, -1.0, 1.0).astype(jnp.float32)

    for l in range(u_ref.shape[0]):                  # static unroll over layers
        state = jnp.dot(u_ref[l], state, preferred_element_type=jnp.float32)

    # <Z0> = sum_k sign_k * (re_k^2 + im_k^2), computed on the stacked column.
    ez = jnp.sum(sign * state * state, axis=0, keepdims=True)    # (1, 1)
    lane = jax.lax.broadcasted_iota(jnp.int32, (1, 2), 1)
    lane_sign = jnp.where(lane == 0, 1.0, -1.0)                  # [+1, -1]
    out_ref[...] = 0.5 * (1.0 + lane_sign * ez)                  # [p, 1 - p]


def run_circuit(u_blk):
    n_layers = u_blk.shape[0]
    return pl.pallas_call(
        circuit_kernel,
        out_shape=jax.ShapeDtypeStruct((1, 2), jnp.float32),
        grid=(1,),
        in_specs=[pl.BlockSpec((n_layers, BDIM, BDIM), lambda i: (0, 0, 0))],
        out_specs=pl.BlockSpec((1, 2), lambda i: (0, 0)),
    )(u_blk)


# ---------------- gate / layer-unitary construction (JAX glue, jitted) ------
def _rot_matrix(phi, theta, omega):
    """PennyLane qml.Rot(phi, theta, omega) = RZ(omega) RY(theta) RZ(phi)."""
    c = jnp.cos(theta / 2.0).astype(jnp.complex64)
    s = jnp.sin(theta / 2.0).astype(jnp.complex64)
    em = jnp.exp(-0.5j * (phi + omega).astype(jnp.complex64))
    ep = jnp.exp(0.5j * (phi + omega).astype(jnp.complex64))
    epm = jnp.exp(0.5j * (phi - omega).astype(jnp.complex64))
    emp = jnp.exp(-0.5j * (phi - omega).astype(jnp.complex64))
    return jnp.stack([jnp.stack([em * c, -epm * s]),
                      jnp.stack([emp * s, ep * c])])


def _kron2(a, b):
    """Kronecker product of 2-D operands; vmap-friendly."""
    m, n = a.shape
    p, q = b.shape
    return (a[:, None, :, None] * b[None, :, None, :]).reshape(m * p, n * q)


def _cnot_ring_np(n_wires):
    """Product of CNOT(i, (i+1)%n) for i = 0..n-1 (later gates act on the left)."""
    d = 2 ** n_wires
    u = np.eye(d)
    for ctrl in range(n_wires):
        tgt = (ctrl + 1) % n_wires
        idx = np.arange(d)
        cbit = (idx >> (n_wires - 1 - ctrl)) & 1
        new_idx = idx ^ (cbit << (n_wires - 1 - tgt))
        c = np.zeros((d, d))
        c[new_idx, idx] = 1.0
        u = c @ u
    return u.astype(np.complex64)


_CNOT_RING_NP = _cnot_ring_np(N_WIRES)               # hoisted host-side constant


def _layer_unitary(angles, cnot_ring):
    """stronglayer(angles, r=1): per-wire Rot then CNOT ring. angles: (3, n_wires)."""
    u = _rot_matrix(angles[0, 0], angles[1, 0], angles[2, 0])
    for w in range(1, N_WIRES):
        u = _kron2(u, _rot_matrix(angles[0, w], angles[1, w], angles[2, w]))
    return jnp.matmul(cnot_ring, u, precision=jax.lax.Precision.HIGHEST)


# ------------------------------- HQC forward --------------------------------
def hqc_forward(x, ce_w, ce_b, qe_optvar, qc_optvar, train_mode=True):
    # 1. classical encoder (Pallas GEMV); output padded 7 -> 128 lanes with zero
    #    weight/bias columns, so the padded lanes are exactly F.pad's zeros.
    x_flat = x.reshape(1, -1).astype(jnp.float32)
    f_in = x_flat.shape[1]
    n_out = ce_w.shape[1]
    w_pad = jnp.zeros((f_in, CE_PAD_OUT), jnp.float32).at[:, :n_out].set(ce_w)
    b_pad = jnp.zeros((1, CE_PAD_OUT), jnp.float32).at[:, :n_out].set(ce_b)
    feats = ce_linear(x_flat, w_pad, b_pad)                       # (1, 128)

    # 2. view + concat with QE_optvar -> angles of every stronglayer
    x_enc = feats[:, :N_QELAYERS * N_WIRES].reshape(N_QELAYERS, 1, N_WIRES)
    qe_param = jnp.concatenate([x_enc, qe_optvar], axis=1)        # (nQE, 3, n_wires)
    if train_mode:
        all_angles = jnp.concatenate([qe_param, qc_optvar], axis=0)
    else:
        all_angles = qe_param

    # 3. per-layer 16x16 complex unitaries (vmapped over layers), packed as
    #    block-complex (L, 32, 32) real matrices [[re, -im], [im, re]].
    cnot_ring = jnp.asarray(_CNOT_RING_NP)
    u = jax.vmap(lambda a: _layer_unitary(a, cnot_ring))(all_angles)   # (L,16,16) c64
    u_re = jnp.real(u).astype(jnp.float32)
    u_im = jnp.imag(u).astype(jnp.float32)
    u_blk = jnp.concatenate(
        [jnp.concatenate([u_re, -u_im], axis=-1),
         jnp.concatenate([u_im, u_re], axis=-1)], axis=-2)        # (L, 32, 32)

    # 4.+5. statevector simulation, <Z0>, and [p, 1-p] inside one Pallas call
    return run_circuit(u_blk)[0]                                  # (2,)


# -------------------------- plain-JAX reference ------------------------------
def _reference_forward(x, ce_w, ce_b, qe_optvar, qc_optvar):
    """No-Pallas reference: complex64 statevector simulation."""
    hp = jax.lax.Precision.HIGHEST
    feats = jnp.dot(x.reshape(1, -1).astype(jnp.float32), ce_w, precision=hp) + ce_b
    feats = jnp.pad(feats, ((0, 0), (0, TO_PAD)))
    x_enc = feats.reshape(N_QELAYERS, 1, N_WIRES)
    qe_param = jnp.concatenate([x_enc, qe_optvar], axis=1)
    all_angles = jnp.concatenate([qe_param, qc_optvar], axis=0)
    cnot_ring = jnp.asarray(_CNOT_RING_NP)
    state = jnp.zeros((DIM,), jnp.complex64).at[0].set(1.0 + 0.0j)
    for l in range(all_angles.shape[0]):
        u_l = _layer_unitary(all_angles[l], cnot_ring)
        state = jnp.matmul(u_l, state, precision=hp)
    sign = jnp.asarray(1.0 - 2.0 * ((np.arange(DIM) >> (N_WIRES - 1)) & 1),
                       jnp.float32)
    ez = jnp.sum(sign * jnp.abs(state) ** 2)
    p = 0.5 * (1.0 + ez)
    return jnp.stack([p, 1.0 - p])


# ---------------------------------- main -------------------------------------
if __name__ == "__main__":
    key = jax.random.PRNGKey(0)
    k_x, k_w, k_b, k_qe, k_qc = jax.random.split(key, 5)

    C, H, W = 4, 8, 8
    x = jax.random.normal(k_x, (1, C, H, W), dtype=jnp.float32)   # NCHW, batch=1

    f_in = C * H * W
    ce_w = jax.random.normal(k_w, (f_in, N_QFEATURES), dtype=jnp.float32) / math.sqrt(f_in)
    ce_b = 0.1 * jax.random.normal(k_b, (1, N_QFEATURES), dtype=jnp.float32)
    qe_optvar = jax.random.normal(k_qe, (N_QELAYERS, 2, N_WIRES), dtype=jnp.float32)
    qc_optvar = jax.random.normal(k_qc, (N_QCLAYERS, 3, N_WIRES), dtype=jnp.float32)

    fwd = jax.jit(hqc_forward, static_argnames=("train_mode",))
    out = jax.block_until_ready(fwd(x, ce_w, ce_b, qe_optvar, qc_optvar,
                                    train_mode=True))
    ref = jax.block_until_ready(
        _reference_forward(x, ce_w, ce_b, qe_optvar, qc_optvar))

    assert out.shape == (2,)
    total = float(out[0] + out[1])
    assert abs(total - 1.0) < 1e-3, f"probabilities must sum to 1, got {total}"
    assert bool(jnp.allclose(out, ref, atol=2e-2)), (
        f"pallas forward {np.asarray(out)} vs reference {np.asarray(ref)}")
    print("KERNEL_OK")
</pallas_src>

<mosaic_0001>
module attributes {stable_mosaic.version = 11 : i64} {
  func.func @ce_kernel(%arg0: i32, %arg1: memref<1x256xf32, #tpu.memory_space<vmem>>, %arg2: memref<256x128xf32, #tpu.memory_space<vmem>>, %arg3: memref<1x128xf32, #tpu.memory_space<vmem>>, %arg4: memref<1x128xf32, #tpu.memory_space<vmem>>) attributes {dimension_semantics = [#tpu.dimension_semantics<arbitrary>], iteration_bounds = array<i64: 1>, scalar_prefetch = 0 : i64, scratch_operands = 0 : i64, tpu.core_type = #tpu.core_type<tc>, window_params = [{pipeline_mode = #tpu.pipeline_mode<synchronous>, transform_indices = @transform_0, window_bounds = array<i64: 1, 256>}, {pipeline_mode = #tpu.pipeline_mode<synchronous>, transform_indices = @transform_1, window_bounds = array<i64: 256, 128>}, {pipeline_mode = #tpu.pipeline_mode<synchronous>, transform_indices = @transform_2, window_bounds = array<i64: 1, 128>}, {pipeline_mode = #tpu.pipeline_mode<synchronous>, transform_indices = @transform_3, window_bounds = array<i64: 1, 128>}]} {
    %c0 = arith.constant 0 : index
    %c0_0 = arith.constant 0 : index
    %0 = vector.load %arg1[%c0, %c0_0] : memref<1x256xf32, #tpu.memory_space<vmem>>, vector<1x256xf32>
    %c0_1 = arith.constant 0 : index
    %c0_2 = arith.constant 0 : index
    %1 = vector.load %arg2[%c0_1, %c0_2] : memref<256x128xf32, #tpu.memory_space<vmem>>, vector<256x128xf32>
    %cst = arith.constant dense<0.000000e+00> : vector<1x128xf32>
    %2 = tpu.matmul %0, %1, %cst {dimension_numbers = #tpu.dot_dimension_numbers<[1], [0], [0], [1], [0, 0, 1, 1], [], []>} : vector<1x256xf32>, vector<256x128xf32>, vector<1x128xf32> -> vector<1x128xf32>
    %c0_3 = arith.constant 0 : index
    %c0_4 = arith.constant 0 : index
    %3 = vector.load %arg3[%c0_3, %c0_4] : memref<1x128xf32, #tpu.memory_space<vmem>>, vector<1x128xf32>
    %4 = arith.addf %2, %3 : vector<1x128xf32>
    %c0_5 = arith.constant 0 : index
    %c0_6 = arith.constant 0 : index
    %5 = vector.load %arg4[%c0_5, %c0_6] : memref<1x128xf32, #tpu.memory_space<vmem>>, vector<1x128xf32>
    tpu.vector_store %arg4[%c0_5, %c0_6], %4 {strides = array<i32>} : memref<1x128xf32, #tpu.memory_space<vmem>>, vector<1x128xf32>,
    return
  }
  func.func @transform_0(%arg0: i32) -> (i32, i32) {
    %c0_i32 = arith.constant 0 : i32
    %c0_i32_0 = arith.constant 0 : i32
    %c0_i32_1 = arith.constant 0 : i32
    return %c0_i32, %c0_i32_0 : i32, i32
  }
  func.func @transform_1(%arg0: i32) -> (i32, i32) {
    %c0_i32 = arith.constant 0 : i32
    %c0_i32_0 = arith.constant 0 : i32
    %c0_i32_1 = arith.constant 0 : i32
    return %c0_i32, %c0_i32_0 : i32, i32
  }
  func.func @transform_2(%arg0: i32) -> (i32, i32) {
    %c0_i32 = arith.constant 0 : i32
    %c0_i32_0 = arith.constant 0 : i32
    %c0_i32_1 = arith.constant 0 : i32
    return %c0_i32, %c0_i32_0 : i32, i32
  }
  func.func @transform_3(%arg0: i32) -> (i32, i32) {
    %c0_i32 = arith.constant 0 : i32
    %c0_i32_0 = arith.constant 0 : i32
    %c0_i32_1 = arith.constant 0 : i32
    return %c0_i32, %c0_i32_0 : i32, i32
  }
}

module attributes {stable_mosaic.version = 11 : i64} {
  func.func @circuit_kernel(%arg0: i32, %arg1: memref<5x32x32xf32, #tpu.memory_space<vmem>>, %arg2: memref<1x2xf32, #tpu.memory_space<vmem>>) attributes {dimension_semantics = [#tpu.dimension_semantics<arbitrary>], iteration_bounds = array<i64: 1>, scalar_prefetch = 0 : i64, scratch_operands = 0 : i64, tpu.core_type = #tpu.core_type<tc>, window_params = [{pipeline_mode = #tpu.pipeline_mode<synchronous>, transform_indices = @transform_0, window_bounds = array<i64: 5, 32, 32>}, {pipeline_mode = #tpu.pipeline_mode<synchronous>, transform_indices = @transform_1, window_bounds = array<i64: 1, 2>}]} {
    %0 = tpu.iota {dimensions = array<i32: 0>} : vector<32x1xi32>
    %c0_i32 = arith.constant 0 : i32
    %1 = vector.broadcast %c0_i32 : i32 to vector<32x1xi32>
    %2 = arith.cmpi eq, %0, %1 : vector<32x1xi32>
    %cst = arith.constant 1.000000e+00 : f32
    %cst_0 = arith.constant 0.000000e+00 : f32
    %3 = vector.broadcast %cst : f32 to vector<32x1xf32>
    %4 = vector.broadcast %cst_0 : f32 to vector<32x1xf32>
    %5 = arith.select %2, %3, %4 : vector<32x1xi1>, vector<32x1xf32>
    %c8_i32 = arith.constant 8 : i32
    %6 = vector.broadcast %c8_i32 : i32 to vector<32x1xi32>
    %7 = arith.andi %0, %6 : vector<32x1xi32>
    %c0_i32_1 = arith.constant 0 : i32
    %8 = vector.broadcast %c0_i32_1 : i32 to vector<32x1xi32>
    %9 = arith.cmpi ne, %7, %8 : vector<32x1xi32>
    %cst_2 = arith.constant -1.000000e+00 : f32
    %cst_3 = arith.constant 1.000000e+00 : f32
    %10 = vector.broadcast %cst_2 : f32 to vector<32x1xf32>
    %11 = vector.broadcast %cst_3 : f32 to vector<32x1xf32>
    %12 = arith.select %9, %10, %11 : vector<32x1xi1>, vector<32x1xf32>
    %c0 = arith.constant 0 : index
    %c0_4 = arith.constant 0 : index
    %c0_5 = arith.constant 0 : index
    %13 = vector.load %arg1[%c0, %c0_4, %c0_5] : memref<5x32x32xf32, #tpu.memory_space<vmem>>, vector<1x32x32xf32>
    %14 = vector.shape_cast %13 : vector<1x32x32xf32> to vector<32x32xf32>
    %cst_6 = arith.constant dense<0.000000e+00> : vector<32x1xf32>
    %15 = tpu.matmul %14, %5, %cst_6 {dimension_numbers = #tpu.dot_dimension_numbers<[1], [0], [0], [1], [0, 0, 1, 1], [], []>} : vector<32x32xf32>, vector<32x1xf32>, vector<32x1xf32> -> vector<32x1xf32>
    %c1 = arith.constant 1 : index
    %c0_7 = arith.constant 0 : index
    %c0_8 = arith.constant 0 : index
    %16 = vector.load %arg1[%c1, %c0_7, %c0_8] : memref<5x32x32xf32, #tpu.memory_space<vmem>>, vector<1x32x32xf32>
    %17 = vector.shape_cast %16 : vector<1x32x32xf32> to vector<32x32xf32>
    %cst_9 = arith.constant dense<0.000000e+00> : vector<32x1xf32>
    %18 = tpu.matmul %17, %15, %cst_9 {dimension_numbers = #tpu.dot_dimension_numbers<[1], [0], [0], [1], [0, 0, 1, 1], [], []>} : vector<32x32xf32>, vector<32x1xf32>, vector<32x1xf32> -> vector<32x1xf32>
    %c2 = arith.constant 2 : index
    %c0_10 = arith.constant 0 : index
    %c0_11 = arith.constant 0 : index
    %19 = vector.load %arg1[%c2, %c0_10, %c0_11] : memref<5x32x32xf32, #tpu.memory_space<vmem>>, vector<1x32x32xf32>
    %20 = vector.shape_cast %19 : vector<1x32x32xf32> to vector<32x32xf32>
    %cst_12 = arith.constant dense<0.000000e+00> : vector<32x1xf32>
    %21 = tpu.matmul %20, %18, %cst_12 {dimension_numbers = #tpu.dot_dimension_numbers<[1], [0], [0], [1], [0, 0, 1, 1], [], []>} : vector<32x32xf32>, vector<32x1xf32>, vector<32x1xf32> -> vector<32x1xf32>
    %c3 = arith.constant 3 : index
    %c0_13 = arith.constant 0 : index
    %c0_14 = arith.constant 0 : index
    %22 = vector.load %arg1[%c3, %c0_13, %c0_14] : memref<5x32x32xf32, #tpu.memory_space<vmem>>, vector<1x32x32xf32>
    %23 = vector.shape_cast %22 : vector<1x32x32xf32> to vector<32x32xf32>
    %cst_15 = arith.constant dense<0.000000e+00> : vector<32x1xf32>
    %24 = tpu.matmul %23, %21, %cst_15 {dimension_numbers = #tpu.dot_dimension_numbers<[1], [0], [0], [1], [0, 0, 1, 1], [], []>} : vector<32x32xf32>, vector<32x1xf32>, vector<32x1xf32> -> vector<32x1xf32>
    %c4 = arith.constant 4 : index
    %c0_16 = arith.constant 0 : index
    %c0_17 = arith.constant 0 : index
    %25 = vector.load %arg1[%c4, %c0_16, %c0_17] : memref<5x32x32xf32, #tpu.memory_space<vmem>>, vector<1x32x32xf32>
    %26 = vector.shape_cast %25 : vector<1x32x32xf32> to vector<32x32xf32>
    %cst_18 = arith.constant dense<0.000000e+00> : vector<32x1xf32>
    %27 = tpu.matmul %26, %24, %cst_18 {dimension_numbers = #tpu.dot_dimension_numbers<[1], [0], [0], [1], [0, 0, 1, 1], [], []>} : vector<32x32xf32>, vector<32x1xf32>, vector<32x1xf32> -> vector<32x1xf32>
    %28 = arith.mulf %12, %27 : vector<32x1xf32>
    %29 = arith.mulf %28, %27 : vector<32x1xf32>
    %cst_19 = arith.constant dense<0.000000e+00> : vector<1xf32>
    %30 = vector.multi_reduction <add>, %29, %cst_19 [0] : vector<32x1xf32> to vector<1xf32>
    %31 = vector.shape_cast %30 : vector<1xf32> to vector<1x1xf32>
    %32 = tpu.iota {dimensions = array<i32: 1>} : vector<1x2xi32>
    %c0_i32_20 = arith.constant 0 : i32
    %33 = vector.broadcast %c0_i32_20 : i32 to vector<1x2xi32>
    %34 = arith.cmpi eq, %32, %33 : vector<1x2xi32>
    %cst_21 = arith.constant 1.000000e+00 : f32
    %cst_22 = arith.constant -1.000000e+00 : f32
    %35 = vector.broadcast %cst_21 : f32 to vector<1x2xf32>
    %36 = vector.broadcast %cst_22 : f32 to vector<1x2xf32>
    %37 = arith.select %34, %35, %36 : vector<1x2xi1>, vector<1x2xf32>
    %38 = vector.broadcast %31 : vector<1x1xf32> to vector<1x2xf32>
    %39 = arith.mulf %37, %38 : vector<1x2xf32>
    %cst_23 = arith.constant 1.000000e+00 : f32
    %40 = vector.broadcast %cst_23 : f32 to vector<1x2xf32>
    %41 = arith.addf %40, %39 : vector<1x2xf32>
    %cst_24 = arith.constant 5.000000e-01 : f32
    %42 = vector.broadcast %cst_24 : f32 to vector<1x2xf32>
    %43 = arith.mulf %42, %41 : vector<1x2xf32>
    %c0_25 = arith.constant 0 : index
    %c0_26 = arith.constant 0 : index
    %44 = vector.load %arg2[%c0_25, %c0_26] : memref<1x2xf32, #tpu.memory_space<vmem>>, vector<1x2xf32>
    tpu.vector_store %arg2[%c0_25, %c0_26], %43 {strides = array<i32>} : memref<1x2xf32, #tpu.memory_space<vmem>>, vector<1x2xf32>,
    return
  }
  func.func @transform_0(%arg0: i32) -> (i32, i32, i32) {
    %c0_i32 = arith.constant 0 : i32
    %c0_i32_0 = arith.constant 0 : i32
    %c0_i32_1 = arith.constant 0 : i32
    %c0_i32_2 = arith.constant 0 : i32
    return %c0_i32, %c0_i32_0, %c0_i32_1 : i32, i32, i32
  }
  func.func @transform_1(%arg0: i32) -> (i32, i32) {
    %c0_i32 = arith.constant 0 : i32
    %c0_i32_0 = arith.constant 0 : i32
    %c0_i32_1 = arith.constant 0 : i32
    return %c0_i32, %c0_i32_0 : i32, i32
  }
}

</mosaic_0001>

<bundles_post_ra>
// kernel: hqc_forward.2
= control target key start
LH: loop header
LB: loop body
LE: loop exit
PB: predicated region body
PF: predicated region fallthrough
CT: control target
= control target key end

     0   :  { %v49_v0 = vlaneseq  ;;  %s294_s1 = inlined_call_operand.vmem [shape: f32[256,128], index: 1, kind: input, shape index: {}]   ;;  %s295_s0 = inlined_call_operand.vmem [shape: f32[1,256], index: 0, kind: input, shape index: {}]   ;;  %s296_s2 = inlined_call_operand.vmem [shape: f32[1,128], index: 2, kind: input, shape index: {}]   ;;  %s297_s3 = inlined_call_operand.vmem [shape: f32[1,128], index: 3, kind: output, shape index: {}]  }
   0x1   :  { %v46_v1 = vld [vmem:[%s294_s1 + $0xf8] sm:$0xff]  ;;  %v45_v3 = vld [vmem:[%s294_s1 + $0xf0] sm:$0xff]  ;;  %v44_v5 = vld [vmem:[%s294_s1 + $0xe8] sm:$0xff] }
   0x2   :  { %v30_v2 = vld [vmem:[%s294_s1 + $0x78] sm:$0xff]  ;;  %134 = vmatprep.subr.mxu0 %v46_v1  ;;  %v29_v4 = vld [vmem:[%s294_s1 + $0x70] sm:$0xff]  ;;  %v28_v6 = vld [vmem:[%s294_s1 + $0x68] sm:$0xff]  ;;  %v50_v7 = vshrl.u32 %v49_v0, 7 }
   0x3   :  { %135 = vmatpush3.msra.mxu0 %v30_v2  ;;  %v43_v8 = vld [vmem:[%s294_s1 + $0xe0] sm:$0xff]  ;;  %v42_v10 = vld [vmem:[%s294_s1 + $0xd8] sm:$0xff]  ;;  %v41_v13 = vld [vmem:[%s294_s1 + $0xd0] sm:$0xff] }
   0x4   :  { %136 = vmatprep.subr.mxu0 %v45_v3  ;;  %v27_v9 = vld [vmem:[%s294_s1 + $0x60] sm:$0xff]  ;;  %v26_v11 = vld [vmem:[%s294_s1 + $0x58] sm:$0xff]  ;;  %v55_v12 = vsub.s32 1, %v50_v7  ;;  %v25_v14 = vld [vmem:[%s294_s1 + $0x50] sm:$0xff]  ;;  %v51_v33 = vsub.s32 0, %v50_v7 }
   0x5   :  { %137 = vmatpush3.msra.mxu0 %v29_v4  ;;  %v40_v15 = vld [vmem:[%s294_s1 + $0xc8] sm:$0xff]  ;;  %v14_v16 = vld [vmem:[%s295_s0] sm:$0x3]  ;;  %v38_v21 = vld [vmem:[%s294_s1 + $0xb8] sm:$0xff] }
   0x6   :  { %138 = vmatprep.subr.mxu0 %v44_v5  ;;  %v24_v17 = vld [vmem:[%s294_s1 + $0x48] sm:$0xff]  ;;  %v56_v18 = vrot.slane %v14_v16, %v55_v12  ;;  %v39_v19 = vld [vmem:[%s294_s1 + $0xc0] sm:$0xff]  ;;  %v22_v22 = vld [vmem:[%s294_s1 + $0x38] sm:$0xff]  ;;  %v52_v38 = vrot.slane %v14_v16, %v51_v33 }
   0x7   :  { %139 = vmatpush3.msra.mxu0 %v28_v6  ;;  %v23_v20 = vld [vmem:[%s294_s1 + $0x40] sm:$0xff]  ;;  %v37_v23 = vld [vmem:[%s294_s1 + $0xb0] sm:$0xff]  ;;  %v36_v25 = vld [vmem:[%s294_s1 + $0xa8] sm:$0xff] }
   0x8   :  { %140 = vmatprep.subr.mxu0 %v43_v8  ;;  %123 = vmatprep.mubr.f32.mxu0 %v56_v18  ;;  %v21_v24 = vld [vmem:[%s294_s1 + $0x30] sm:$0xff]  ;;  %v20_v26 = vld [vmem:[%s294_s1 + $0x28] sm:$0xff]  ;;  %v35_v27 = vld [vmem:[%s294_s1 + $0xa0] sm:$0xff] }
   0x9   :  { %141 = vmatpush3.msra.mxu0 %v27_v9  ;;  %v19_v28 = vld [vmem:[%s294_s1 + $0x20] sm:$0xff]  ;;  %v34_v29 = vld [vmem:[%s294_s1 + $0x98] sm:$0xff]  ;;  %v33_v31 = vld [vmem:[%s294_s1 + $0x90] sm:$0xff] }
   0xa   :  { %142 = vmatprep.subr.mxu0 %v42_v10  ;;  %v18_v30 = vld [vmem:[%s294_s1 + $0x18] sm:$0xff]  ;;  %v17_v32 = vld [vmem:[%s294_s1 + $0x10] sm:$0xff]  ;;  %v32_v34 = vld [vmem:[%s294_s1 + $0x88] sm:$0xff] }
   0xb   :  { %143 = vmatpush3.msra.mxu0 %v26_v11  ;;  %v16_v35 = vld [vmem:[%s294_s1 + $0x8] sm:$0xff]  ;;  %v31_v36 = vld [vmem:[%s294_s1 + $0x80] sm:$0xff] }
   0xc   :  { %144 = vmatprep.subr.mxu0 %v41_v13  ;;  %v15_v37 = vld [vmem:[%s294_s1] sm:$0xff] }
   0xd   :  { %145 = vmatpush3.msra.mxu0 %v25_v14  ;;  %v47_v40 = vld [vmem:[%s296_s2] sm:$0x1] }
   0xe   :  { %146 = vmatprep.subr.mxu0 %v40_v15 }
   0xf   :  { %147 = vmatpush3.msra.mxu0 %v24_v17 }
  0x10   :  { %148 = vmatprep.subr.mxu0 %v39_v19 }
  0x11   :  { %149 = vmatpush3.msra.mxu0 %v23_v20 }
  0x12   :  { %150 = vmatprep.subr.mxu0 %v38_v21 }
  0x13   :  { %151 = vmatpush3.msra.mxu0 %v22_v22 }
  0x14   :  { %152 = vmatprep.subr.mxu0 %v37_v23 }
  0x15   :  { %153 = vmatpush3.msra.mxu0 %v21_v24 }
  0x16   :  { %154 = vmatprep.subr.mxu0 %v36_v25 }
  0x17   :  { %155 = vmatpush3.msra.mxu0 %v20_v26 }
  0x18   :  { %156 = vmatprep.subr.mxu0 %v35_v27 }
  0x19   :  { %157 = vmatpush3.msra.mxu0 %v19_v28 }
  0x1a   :  { %158 = vmatprep.subr.mxu0 %v34_v29 }
  0x1b   :  { %159 = vmatpush3.msra.mxu0 %v18_v30 }
  0x1c   :  { %160 = vmatprep.subr.mxu0 %v33_v31 }
  0x1d   :  { %161 = vmatpush3.msra.mxu0 %v17_v32 }
  0x1e   :  { %162 = vmatprep.subr.mxu0 %v32_v34 }
  0x1f   :  { %163 = vmatpush3.msra.mxu0 %v16_v35 }
  0x20   :  { %164 = vmatprep.subr.mxu0 %v31_v36 }
  0x21   :  { %165 = vmatpush3.msra.mxu0 %v15_v37 }
  0x22   :  { %124 = vmatmul.mubr.f32.vlgmr.msra.gmra.mxu0 %v52_v38 }
  0xe2   :  { %v166_v39 = vpop.f32.mrf.mxu0 }
  0xe4   :  { %v167_v41 = vpop.f32.mrf.mxu0 }
  0xe5   :  { %v168_v42 = vadd.f32 %v167_v41, %v166_v39 }
  0xe7   :  { %v126_v43 = vadd.f32 %v168_v42, %v47_v40 }
  0xe9   :  { %129 = vst [vmem:[%s297_s3] sm:$0x1] %v126_v43 }

// kernel: hqc_forward.3
= control target key start
LH: loop header
LB: loop body
LE: loop exit
PB: predicated region body
PF: predicated region fallthrough
CT: control target
= control target key end

     0   :  { %v9_v0 = vlaneseq  ;;  %vm38_vm0 = vcmask 261120   ;;  %s858_s0 = inlined_call_operand.vmem [shape: f32[5,32,32], index: 0, kind: input, shape index: {}]   ;;  %s859_s1 = inlined_call_operand.hbm [shape: f32[1,2], index: 1, kind: output, shape index: {}]  }
   0x1   :  { %v34_v1 = vld [vmem:[%s858_s0] sm:$0xff] }
   0x2   :  { %670 = vmatprep.mubr.msk.f32.mxu0 %vm38_vm0, %v34_v1 }
   0x3   :  { %6 = vsyncpa [#allocation3], 0  ;;  %v10_v2 = vshrl.u32 %v9_v0, 7  ;;  %v35_v3 = vld [vmem:[%s858_s0 + $0x8] sm:$0xff]  ;;  %v759_v4 = vmov 1.0   ;;  %v36_v5 = vld [vmem:[%s858_s0 + $0x10] sm:$0xff] }
   0x4   :  { %v37_v6 = vld [vmem:[%s858_s0 + $0x18] sm:$0xff]  ;;  %v599_v7 = vld [vmem:[%s858_s0 + $0x20] sm:$0xff]  ;;  %v600_v12 = vld [vmem:[%s858_s0 + $0x28] sm:$0xff]  ;;  %v760_v39 = vmov 0   ;;  %vm552_vm2 = vcmask 7168   ;;  %v567_v63 = vand.u32 127, %v9_v0 }
   0x5   :  { %vm14_vm1 = vcmp.eq.s32.totalorder %v10_v2, 0  ;;  %684 = vmatprep.mubr.msk.f32.mxu1 %vm38_vm0, %v599_v7  ;;  %v601_v13 = vld [vmem:[%s858_s0 + $0x30] sm:$0xff]  ;;  %v602_v14 = vld [vmem:[%s858_s0 + $0x38] sm:$0xff]  ;;  %v607_v15 = vld [vmem:[%s858_s0 + $0x40] sm:$0xff]  ;;  %736 = vset.pattern.permute.xlu0 %v760_v39  ;;  %v761_v1 = vmov -1.0   ;;  %vm578_vm4 = vcmask 8192  }
   0x6   :  { %668 = vmatprep.subr.msk.mxu0 %vm14_vm1, %v759_v4  ;;  %v608_v20 = vld [vmem:[%s858_s0 + $0x48] sm:$0xff]  ;;  %v609_v21 = vld [vmem:[%s858_s0 + $0x50] sm:$0xff]  ;;  %v610_v22 = vld [vmem:[%s858_s0 + $0x58] sm:$0xff]  ;;  %vm568_vm3 = vcmp.eq.s32.totalorder %v567_v63, 0 }
   0x7   :  { %669 = vmatpush3.msk.msra.mxu0 %vm14_vm1, %v759_v4  ;;  %v615_v23 = vld [vmem:[%s858_s0 + $0x60] sm:$0xff]  ;;  %v616_v28 = vld [vmem:[%s858_s0 + $0x68] sm:$0xff]  ;;  %v617_v29 = vld [vmem:[%s858_s0 + $0x70] sm:$0xff]  ;;  %v569_v2 = vsel %vm568_vm3, 1.0, %v761_v1 }
   0x8   :  { %671 = vmatmul.mubr.msk.f32.vlgmr.msra.gmra.mxu0 %vm38_vm0, %v35_v3  ;;  %v618_v30 = vld [vmem:[%s858_s0 + $0x78] sm:$0xff]  ;;  %v623_v31 = vld [vmem:[%s858_s0 + $0x80] sm:$0xff]  ;;  %v624_v36 = vld [vmem:[%s858_s0 + $0x88] sm:$0xff] }
   0x9   :  { %673 = vmatprep.mubr.msk.f32.mxu0 %vm38_vm0, %v36_v5  ;;  %v625_v37 = vld [vmem:[%s858_s0 + $0x90] sm:$0xff]  ;;  %v626_v38 = vld [vmem:[%s858_s0 + $0x98] sm:$0xff]  ;;  %s762_s0 = smov [#allocation2]  }
   0xa   :  { %s586_s17 = sshll.u32 %s762_s0, 4  ;;  %s587_s17 = int_to_ptr.vmem [resolvable:$true] %s586_s17 }
   0xb   :  { %s737_s18 = scalar_lea.vmem %s587_s17, 16  ;;  %s741_s19 = scalar_lea.vmem %s587_s17, 32 }
   0xc   :  { %674 = vmatmul.mubr.msk.f32.gmra.mxu0 %vm38_vm0, %v37_v6  ;;  %p738_p0 = scmp.ne.s32.totalorder %s587_s17, %s737_s18  ;;  %p742_p1 = scmp.lt.s32.totalorder %s587_s17, %s587_s17 }
   0xd   :  { %698 = vmatprep.mubr.msk.f32.mxu0 %vm38_vm0, %v607_v15  ;;  %p743_p2 = scmp.lt.s32.totalorder %s741_s19, %s737_s18 }
   0xf   :  { %p744_p3 = por %p743_p2, %p742_p1 }
  0x11   :  { %p745_p4 = pnand %p744_p3, %p738_p0 }
  0xc8   :  { %v672_v8 = vpop.f32.mrf.mxu0 }
  0xca   :  { %v117_v9 = vpop.f32.mrf.mxu0 }
  0xcc   :  { %v675_v10 = vpop.f32.mrf.mxu0 }
  0xcd   :  { %676 = vmatprep.subr.mxu1 %v675_v10 }
  0xce   :  { %v127_v11 = vpop.f32.mrf.mxu0  ;;  %677 = vmatpush3.msra.mxu1 %v675_v10 }
  0xcf   :  { %678 = vmatprep.subr.mxu1 %v127_v11 }
  0xd0   :  { %679 = vmatpush3.msra.mxu1 %v127_v11 }
  0xd1   :  { %680 = vmatprep.subr.mxu1 %v672_v8 }
  0xd2   :  { %681 = vmatpush3.msra.mxu1 %v672_v8 }
  0xd3   :  { %682 = vmatprep.subr.mxu1 %v117_v9 }
  0xd4   :  { %683 = vmatpush3.msra.mxu1 %v117_v9 }
  0xd5   :  { %685 = vmatmul.mubr.msk.f32.vlgmr.msra.gmra.mxu1 %vm38_vm0, %v600_v12 }
  0xd6   :  { %687 = vmatprep.mubr.msk.f32.mxu1 %vm38_vm0, %v601_v13 }
  0xd9   :  { %688 = vmatmul.mubr.msk.f32.gmra.mxu1 %vm38_vm0, %v602_v14 }
  0xda   :  { %712 = vmatprep.mubr.msk.f32.mxu1 %vm38_vm0, %v615_v23 }
 0x195   :  { %v686_v16 = vpop.f32.mrf.mxu1 }
 0x197   :  { %v219_v17 = vpop.f32.mrf.mxu1 }
 0x199   :  { %v689_v18 = vpop.f32.mrf.mxu1 }
 0x19a   :  { %690 = vmatprep.subr.mxu0 %v689_v18 }
 0x19b   :  { %v229_v19 = vpop.f32.mrf.mxu1  ;;  %691 = vmatpush3.msra.mxu0 %v689_v18 }
 0x19c   :  { %692 = vmatprep.subr.mxu0 %v229_v19 }
 0x19d   :  { %693 = vmatpush3.msra.mxu0 %v229_v19 }
 0x19e   :  { %694 = vmatprep.subr.mxu0 %v686_v16 }
 0x19f   :  { %695 = vmatpush3.msra.mxu0 %v686_v16 }
 0x1a0   :  { %696 = vmatprep.subr.mxu0 %v219_v17 }
 0x1a1   :  { %697 = vmatpush3.msra.mxu0 %v219_v17 }
 0x1a2   :  { %699 = vmatmul.mubr.msk.f32.vlgmr.msra.gmra.mxu0 %vm38_vm0, %v608_v20 }
 0x1a3   :  { %701 = vmatprep.mubr.msk.f32.mxu0 %vm38_vm0, %v609_v21 }
 0x1a6   :  { %702 = vmatmul.mubr.msk.f32.gmra.mxu0 %vm38_vm0, %v610_v22 }
 0x1a7   :  { %726 = vmatprep.mubr.msk.f32.mxu0 %vm38_vm0, %v623_v31 }
 0x262   :  { %v700_v24 = vpop.f32.mrf.mxu0 }
 0x264   :  { %v321_v25 = vpop.f32.mrf.mxu0 }
 0x266   :  { %v703_v26 = vpop.f32.mrf.mxu0 }
 0x267   :  { %704 = vmatprep.subr.mxu1 %v703_v26 }
 0x268   :  { %v331_v27 = vpop.f32.mrf.mxu0  ;;  %705 = vmatpush3.msra.mxu1 %v703_v26 }
 0x269   :  { %706 = vmatprep.subr.mxu1 %v331_v27 }
 0x26a   :  { %707 = vmatpush3.msra.mxu1 %v331_v27 }
 0x26b   :  { %708 = vmatprep.subr.mxu1 %v700_v24 }
 0x26c   :  { %709 = vmatpush3.msra.mxu1 %v700_v24 }
 0x26d   :  { %710 = vmatprep.subr.mxu1 %v321_v25 }
 0x26e   :  { %711 = vmatpush3.msra.mxu1 %v321_v25 }
 0x26f   :  { %713 = vmatmul.mubr.msk.f32.vlgmr.msra.gmra.mxu1 %vm38_vm0, %v616_v28 }
 0x270   :  { %715 = vmatprep.mubr.msk.f32.mxu1 %vm38_vm0, %v617_v29 }
 0x273   :  { %716 = vmatmul.mubr.msk.f32.gmra.mxu1 %vm38_vm0, %v618_v30 }
 0x32f   :  { %v714_v32 = vpop.f32.mrf.mxu1 }
 0x331   :  { %v423_v33 = vpop.f32.mrf.mxu1 }
 0x333   :  { %v717_v34 = vpop.f32.mrf.mxu1 }
 0x334   :  { %718 = vmatprep.subr.mxu0 %v717_v34 }
 0x335   :  { %v433_v35 = vpop.f32.mrf.mxu1  ;;  %719 = vmatpush3.msra.mxu0 %v717_v34 }
 0x336   :  { %720 = vmatprep.subr.mxu0 %v433_v35 }
 0x337   :  { %721 = vmatpush3.msra.mxu0 %v433_v35 }
 0x338   :  { %722 = vmatprep.subr.mxu0 %v714_v32 }
 0x339   :  { %723 = vmatpush3.msra.mxu0 %v714_v32 }
 0x33a   :  { %724 = vmatprep.subr.mxu0 %v423_v33 }
 0x33b   :  { %725 = vmatpush3.msra.mxu0 %v423_v33 }
 0x33c   :  { %727 = vmatmul.mubr.msk.f32.vlgmr.msra.gmra.mxu0 %vm38_vm0, %v624_v36 }
 0x33d   :  { %729 = vmatprep.mubr.msk.f32.mxu0 %vm38_vm0, %v625_v37 }
 0x340   :  { %730 = vmatmul.mubr.msk.f32.gmra.mxu0 %vm38_vm0, %v626_v38 }
 0x3fc   :  { %v728_v40 = vpop.f32.mrf.mxu0 }
 0x3fd   :  { %v545_v41 = vmul.f32 -1.0, %v728_v40 }
 0x3fe   :  { %v525_v42 = vpop.f32.mrf.mxu0 }
 0x3ff   :  { %v549_v43 = vmul.f32 %v728_v40, %v545_v41  ;;  %v548_v44 = vmul.f32 %v525_v42, %v525_v42 }
 0x400   :  { %v731_v45 = vpop.f32.mrf.mxu0 }
 0x401   :  { %v554_v46 = vsel %vm552_vm2, %v549_v43, 0.0  ;;  %v553_v47 = vsel %vm552_vm2, %v548_v44, 0.0  ;;  %v547_v48 = vmul.f32 -1.0, %v731_v45 }
 0x402   :  { %v535_v49 = vpop.f32.mrf.mxu0  ;;  %v555_v52 = vadd.f32 %v554_v46, %v553_v47 }
 0x403   :  { %v551_v50 = vmul.f32 %v731_v45, %v547_v48  ;;  %v550_v51 = vmul.f32 %v535_v49, %v535_v49 }
 0x405   :  { %v556_v53 = vsel %vm552_vm2, %v550_v51, 0.0  ;;  %v558_v55 = vsel %vm552_vm2, %v551_v50, 0.0 }
 0x406   :  { %v557_v54 = vadd.f32 %v556_v53, %v555_v52 }
 0x408   :  { %v559_v56 = vadd.f32 %v558_v55, %v557_v54 }
 0x40a   :  { %v560_v57 = vrot.slane %v559_v56, 4 }
 0x40c   :  { %v561_v58 = vadd.f32 %v560_v57, %v559_v56 }
 0x40e   :  { %v562_v59 = vrot.slane %v561_v58, 2 }
 0x410   :  { %v563_v60 = vadd.f32 %v562_v59, %v561_v58 }
 0x412   :  { %v564_v61 = vrot.slane %v563_v60, 1 }
 0x414   :  { %v565_v62 = vadd.f32 %v564_v61, %v563_v60 }
 0x416   :  { %572 = vperm.xlu0 %736, %v565_v62  }
 0x491   :  { %v573_v3 = vpop.permute.xlu0 %572 }
 0x492   :  { %v575_v4 = vmul.f32 %v573_v3, %v569_v2 }
 0x494   :  { %v576_v5 = vadd.f32 1.0, %v575_v4 }
 0x496   :  { %v577_v6 = vmul.f32 0.5, %v576_v5 }
 0x498   :  { %579 = vst.msk [vmem:[#allocation2] sm:$0x1] %vm578_vm4, %v577_v6 }
 0x499   :  { %748 = shalt.err (!%p745_p4)
}
 0x49a   :  { %589 = dma.vmem_to_hbm [thread:$0]  %s587_s17, 16, %s859_s1, [#allocation3]  }
 0x49b   :  { %757 = dma.done.wait [#allocation3], 16  }
 0x49c   :  { %758 = vsyncadd [#allocation3], 4294967280 }
 0x49d   :  { %593 = vsyncpa [#allocation3], 1 }

</bundles_post_ra>
